<compile_context>
chip_gen: v5e
topology: v5e:2x2
jax: 0.10.0
libtpu: 0.0.40
codegen_flags: <defaults>
</compile_context>

<pallas_src>
import jax
import jax.numpy as jnp
from jax.experimental import pallas as pl
from jax.experimental.pallas import tpu as pltpu


def _extract_dma_kernel(idx_ref, x_ref, o_ref, sem):
    """Copy x[:, idx:idx+1, :] -> o with one strided DMA.

    idx_ref : SMEM scalar-prefetch ref holding the channel index.
    x_ref   : (N, C, H*W) ref left in place (memory_space=pl.ANY, no auto-DMA).
    o_ref   : (N, 1, H*W) ref left in place.
    sem     : DMA completion semaphore.
    """
    idx = idx_ref[0]
    cp = pltpu.make_async_copy(x_ref.at[:, pl.ds(idx, 1), :], o_ref, sem)
    cp.start()
    cp.wait()


def extract_feature(x: jax.Array, index) -> jax.Array:
    """Pallas implementation of ExtractFeature: y = x[:, index, :, :]."""
    if x.ndim != 4:
        raise ValueError(f"`input`'s number of dimensions must be 4, but got {x.ndim}.")
    N, C, H, W = x.shape
    # Only range-check concrete Python ints; traced indices are passed through.
    if isinstance(index, int) and not (0 <= index < C):
        raise ValueError(f"index {index} out of range for C={C}")
    L = H * W

    # Channel index travels through SMEM scalar prefetch.
    idx = jnp.asarray([index], dtype=jnp.int32).reshape(1)

    x3 = x.reshape(N, C, L)  # contiguous reshape: free

    out3 = pl.pallas_call(
        _extract_dma_kernel,
        out_shape=jax.ShapeDtypeStruct((N, 1, L), x.dtype),
        grid_spec=pltpu.PrefetchScalarGridSpec(
            num_scalar_prefetch=1,
            grid=(1,),
            in_specs=[pl.BlockSpec(memory_space=pl.ANY)],   # raw ref, manual DMA
            out_specs=pl.BlockSpec(memory_space=pl.ANY),
            scratch_shapes=[pltpu.SemaphoreType.DMA],
        ),
        compiler_params=pltpu.CompilerParams(
            dimension_semantics=("arbitrary",),
        ),
    )(idx, x3)

    return out3.reshape(N, H, W)


if __name__ == "__main__":
    key = jax.random.PRNGKey(0)

    # Primary test (matches the module's expected usage).
    N, C, H, W = 2, 4, 16, 16
    index = 2
    x = jax.random.normal(key, (N, C, H, W), dtype=jnp.float32)
    y = jax.block_until_ready(extract_feature(x, index))
    y_ref = x[:, index, :, :]
    assert y.shape == (N, H, W), y.shape
    assert jnp.array_equal(y, y_ref), "mismatch vs reference"

    # Odd spatial size (H*W not a multiple of 128): DMA windows are element-granular,
    # so the same single-DMA path handles it with no fallback branch.
    x_odd = jax.random.normal(jax.random.PRNGKey(1), (3, 5, 5, 7), dtype=jnp.float32)
    y_odd = jax.block_until_ready(extract_feature(x_odd, 3))
    assert jnp.array_equal(y_odd, x_odd[:, 3, :, :]), "mismatch vs reference (odd shape)"

    print("KERNEL_OK")
</pallas_src>

<mosaic_0001>
module attributes {stable_mosaic.version = 11 : i64} {
  func.func @_extract_dma_kernel(%arg0: i32, %arg1: memref<1xi32, #tpu.memory_space<smem>>, %arg2: memref<2x4x256xf32, #tpu.memory_space<any>>, %arg3: memref<2x1x256xf32, #tpu.memory_space<any>>, %arg4: memref<!tpu.dma_semaphore, #tpu.memory_space<semaphore_mem>>) attributes {dimension_semantics = [#tpu.dimension_semantics<arbitrary>], iteration_bounds = array<i64: 1>, scalar_prefetch = 1 : i64, scratch_operands = 1 : i64, tpu.core_type = #tpu.core_type<tc>, window_params = [{}, {}]} {
    %c0 = arith.constant 0 : index
    %0 = memref.load %arg1[%c0] : memref<1xi32, #tpu.memory_space<smem>>
    %c0_i32 = arith.constant 0 : i32
    %c0_i32_0 = arith.constant 0 : i32
    %1 = tpu.memref_slice %arg2[%c0_i32, %0, %c0_i32_0] : memref<2x4x256xf32, #tpu.memory_space<any>> -> memref<2x1x256xf32, #tpu.memory_space<any>>
    tpu.enqueue_dma source(%1 : memref<2x1x256xf32, #tpu.memory_space<any>>) target(%arg3 : memref<2x1x256xf32, #tpu.memory_space<any>>) target_semaphore(%arg4 : memref<!tpu.dma_semaphore, #tpu.memory_space<semaphore_mem>>)
    %c0_i32_1 = arith.constant 0 : i32
    %c0_i32_2 = arith.constant 0 : i32
    %2 = tpu.memref_slice %arg2[%c0_i32_1, %0, %c0_i32_2] : memref<2x4x256xf32, #tpu.memory_space<any>> -> memref<2x1x256xf32, #tpu.memory_space<any>>
    tpu.wait_dma2 semaphore(%arg4 : memref<!tpu.dma_semaphore, #tpu.memory_space<semaphore_mem>>) src(%2 : memref<2x1x256xf32, #tpu.memory_space<any>>) dst(%arg3 : memref<2x1x256xf32, #tpu.memory_space<any>>)
    return
  }
}

</mosaic_0001>

<bundles_post_ra>
// kernel: tpu_custom_call.1
= control target key start
LH: loop header
LB: loop body
LE: loop exit
PB: predicated region body
PF: predicated region fallthrough
CT: control target
= control target key end

     0   :  { %s55_s24 = smov 64   ;;  %s56_s25 = smov 16   ;;  %s88_s0 = inlined_call_operand.<no memory space> [shape: s32[1], index: 0, kind: input, shape index: {}]   ;;  %s89_s1 = inlined_call_operand.hbm [shape: f32[2,4,256], index: 1, kind: input, shape index: {}]   ;;  %s90_s2 = inlined_call_operand.hbm [shape: f32[2,1,256], index: 2, kind: output, shape index: {}]  }
   0x1   :  { %s9_s11 = sshrl.u32 %s88_s0, 2  ;;  %s10_s14 = sand.u32 3, %s88_s0  }
   0x2   :  { %s45_s15 = sshll.u32 %s9_s11, 3  ;;  %s20_s18 = sshll.u32 %s90_s2, 4  ;;  %s21_s18 = int_to_ptr.hbm [resolvable:$true] %s20_s18 }
   0x3   :  { %s12_s19 = sadd.s32 %s45_s15, %s10_s14  ;;  %25 = sst [smem:[#allocation6]] %s55_s24 }
   0x4   :  { %s13_s22 = scalar_lea.hbm %s89_s1, %s12_s19  ;;  %27 = sst [smem:[#allocation6 + $0x1]] %s56_s25 }
   0x5   :  { %s18_s23 = sshll.u32 %s13_s22, 4  ;;  %s57_s26 = smov 1   ;;  %s19_s23 = int_to_ptr.hbm [resolvable:$true] %s18_s23 }
   0x6   :  { %29 = sst [smem:[#allocation6 + $0x2]] %s57_s26  ;;  %s58_s0 = smov [#allocation2]  }
   0x7   :  { %s59_s27 = smov [#allocation5]   ;;  %s60_s28 = smov 0  }
   0x8   :  { %31 = dma.general %s19_s23, 64, %s21_s18, %s58_s0, %s59_s27, [#allocation6], %s60_s28, 0  }
   0x9   :  { %53 = dma.done.wait [#allocation2], 64 }
   0xa   :  { %54 = vsyncadd [#allocation2], 4294967232 }
   0xb   :  { %36 = vsyncmov [#allocation2] }
   0xe   :  { %s37_s2 = vpop.sfrf %36 }
   0xf   :  { %p46_p0 = scmp.ne.s32.totalorder %s37_s2, 0 }
  0x11   :  { %41 = shalt.err (%p46_p0)  }

</bundles_post_ra>
